<compile_context>
chip_gen: v6e
topology: v6e:2x2x1
jax: 0.10.0
libtpu: 0.0.40
codegen_flags: <defaults>
</compile_context>

<pallas_src>
import functools

import jax
import jax.numpy as jnp
from jax.experimental import pallas as pl
from jax.experimental.pallas import tpu as pltpu

EPS = 1e-5  # PyTorch InstanceNorm2d default (affine=False, biased variance)


def _iid_mapping_in_kernel(x_ref, wt_ref, o_ref, y_slab, sum_ref, ssq_ref,
                           *, t_hw, num_k, hw_total):
    # x_ref : (1, Cin, T_HW)  tile of one batch element (pipelined over k)
    # wt_ref: (Cout, Cin)     conv weight, resident
    # o_ref : (1, Cout, HW)   resident across the k axis (written on last k)
    # y_slab: (Cout, HW) f32  un-normalized conv output, resident scratch
    # sum_ref, ssq_ref: (Cout, 1) f32 running statistics
    k = pl.program_id(1)

    @pl.when(k == 0)
    def _init():
        sum_ref[...] = jnp.zeros_like(sum_ref)
        ssq_ref[...] = jnp.zeros_like(ssq_ref)

    # 1x1 conv == (Cout, Cin) @ (Cin, T_HW); f32 accumulation on the MXU.
    y = jnp.dot(wt_ref[...], x_ref[0],
                preferred_element_type=jnp.float32)          # (Cout, T_HW) f32

    if num_k == 1:
        y_slab[...] = y
    else:
        start = pl.multiple_of(k * t_hw, 128)
        y_slab[:, pl.ds(start, t_hw)] = y

    # Fused single-sweep statistics (last-axis reduce -> XLU slot).
    sum_ref[...] += jnp.sum(y, axis=1, keepdims=True)
    ssq_ref[...] += jnp.sum(y * y, axis=1, keepdims=True)

    @pl.when(k == num_k - 1)
    def _finalize():
        inv_hw = jnp.float32(1.0 / hw_total)
        mean = sum_ref[...] * inv_hw                          # (Cout, 1)
        var = jnp.maximum(ssq_ref[...] * inv_hw - mean * mean, 0.0)
        scale = jax.lax.rsqrt(var + EPS)                      # EUP slot
        y_all = y_slab[...]                                   # (Cout, HW) f32
        o_ref[0] = jnp.maximum((y_all - mean) * scale, 0.0).astype(o_ref.dtype)


def _pick_hw_tile(hw):
    # Largest 128-multiple divisor of HW up to 2048 rows worth of lanes.
    for cand in (2048, 1024, 512, 256, 128):
        if hw % cand == 0:
            return cand
    return hw  # odd spatial sizes: fall back to a single full-HW block


def iid_mapping_in_forward(x_nchw, weight, bias=None):
    """Forward of Conv2d(1x1, bias) -> InstanceNorm2d -> ReLU.

    x_nchw: (N, Cin, H, W)
    weight: (Cout, Cin)  -- PyTorch Conv2d weight (Cout, Cin, 1, 1) squeezed
    bias:   (Cout,) or None -- a per-channel constant shift cancels exactly
            through InstanceNorm2d(affine=False), so it is not used in-kernel.
    """
    del bias  # mathematically removed by the instance-norm mean subtraction
    N, Cin, H, W = x_nchw.shape
    Cout = weight.shape[0]
    HW = H * W

    x = x_nchw.reshape(N, Cin, HW)          # pure reshape, no HBM transpose
    t_hw = _pick_hw_tile(HW)
    num_k = HW // t_hw

    kernel = functools.partial(
        _iid_mapping_in_kernel, t_hw=t_hw, num_k=num_k, hw_total=HW)

    out = pl.pallas_call(
        kernel,
        out_shape=jax.ShapeDtypeStruct((N, Cout, HW), x.dtype),
        grid_spec=pltpu.PrefetchScalarGridSpec(
            num_scalar_prefetch=0,
            grid=(N, num_k),
            in_specs=[
                pl.BlockSpec((1, Cin, t_hw), lambda n, k: (n, 0, k)),
                pl.BlockSpec((Cout, Cin), lambda n, k: (0, 0)),
            ],
            # Same block index across k -> output tile stays resident in VMEM
            # until the batch index changes; written once on the last k.
            out_specs=pl.BlockSpec((1, Cout, HW), lambda n, k: (n, 0, 0)),
            scratch_shapes=[
                pltpu.VMEM((Cout, HW), jnp.float32),   # un-normalized y slab
                pltpu.VMEM((Cout, 1), jnp.float32),    # running sum
                pltpu.VMEM((Cout, 1), jnp.float32),    # running sum of squares
            ],
        ),
        compiler_params=pltpu.CompilerParams(
            dimension_semantics=("parallel", "arbitrary"),
            # Above the 16/32 MiB scoped defaults, headroom vs v7x's 64 MiB.
            vmem_limit_bytes=48 * 1024 * 1024,
        ),
    )(x, weight)

    return out.reshape(N, Cout, H, W)       # pure reshape back to NCHW


def reference_forward(x_nchw, weight, bias):
    """Pure-JAX reference matching PyTorch Conv2d(1x1)+InstanceNorm2d+ReLU."""
    y = jnp.einsum("nchw,oc->nohw", x_nchw, weight) + bias[None, :, None, None]
    mean = jnp.mean(y, axis=(2, 3), keepdims=True)
    var = jnp.mean((y - mean) ** 2, axis=(2, 3), keepdims=True)
    y = (y - mean) / jnp.sqrt(var + EPS)
    return jnp.maximum(y, 0.0)


if __name__ == "__main__":
    key = jax.random.PRNGKey(0)
    k_x, k_w, k_b = jax.random.split(key, 3)

    # Small shapes consistent with the module's forward
    N, Cin, H, W = 2, 4, 16, 16
    Cout = 8

    x = jax.random.normal(k_x, (N, Cin, H, W), dtype=jnp.float32)
    # PyTorch Conv2d(nin, nout, 1) weight is (Cout, Cin, 1, 1); stored squeezed.
    weight = jax.random.normal(k_w, (Cout, Cin), dtype=jnp.float32) * 0.1
    bias = jax.random.normal(k_b, (Cout,), dtype=jnp.float32) * 0.1

    out = iid_mapping_in_forward(x, weight, bias)
    out = jax.block_until_ready(out)

    ref = reference_forward(x, weight, bias)
    assert out.shape == (N, Cout, H, W), out.shape
    max_err = float(jnp.max(jnp.abs(out - ref)))
    assert jnp.allclose(out, ref, atol=1e-4, rtol=1e-4), max_err
    print("KERNEL_OK")
</pallas_src>

<mosaic_0001>
module attributes {stable_mosaic.version = 11 : i64} {
  func.func @_iid_mapping_in_kernel(%arg0: i32, %arg1: i32, %arg2: memref<1x4x256xf32, #tpu.memory_space<vmem>>, %arg3: memref<8x4xf32, #tpu.memory_space<vmem>>, %arg4: memref<1x8x256xf32, #tpu.memory_space<vmem>>, %arg5: memref<8x256xf32, #tpu.memory_space<vmem>>, %arg6: memref<8x1xf32, #tpu.memory_space<vmem>>, %arg7: memref<8x1xf32, #tpu.memory_space<vmem>>) attributes {dimension_semantics = [#tpu.dimension_semantics<parallel>, #tpu.dimension_semantics<arbitrary>], iteration_bounds = array<i64: 2, 1>, scalar_prefetch = 0 : i64, scratch_operands = 3 : i64, tpu.core_type = #tpu.core_type<tc>, window_params = [{transform_indices = @transform_0, window_bounds = array<i64: 1, 4, 256>}, {pipeline_mode = #tpu.pipeline_mode<synchronous>, transform_indices = @transform_1, window_bounds = array<i64: 8, 4>}, {transform_indices = @transform_2, window_bounds = array<i64: 1, 8, 256>}]} {
    %c0_i32 = arith.constant 0 : i32
    %0 = arith.cmpi eq, %arg1, %c0_i32 : i32
    %1 = arith.extui %0 : i1 to i32
    %c0_i32_0 = arith.constant 0 : i32
    %2 = arith.cmpi ne, %1, %c0_i32_0 : i32
    scf.if %2 {
      %cst_19 = arith.constant 0.000000e+00 : f32
      %22 = vector.broadcast %cst_19 : f32 to vector<8x1xf32>
      %c0_20 = arith.constant 0 : index
      %c0_21 = arith.constant 0 : index
      %23 = vector.load %arg6[%c0_20, %c0_21] : memref<8x1xf32, #tpu.memory_space<vmem>>, vector<8x1xf32>
      tpu.vector_store %arg6[%c0_20, %c0_21], %22 {strides = array<i32>} : memref<8x1xf32, #tpu.memory_space<vmem>>, vector<8x1xf32>,
      %cst_22 = arith.constant 0.000000e+00 : f32
      %24 = vector.broadcast %cst_22 : f32 to vector<8x1xf32>
      %c0_23 = arith.constant 0 : index
      %c0_24 = arith.constant 0 : index
      %25 = vector.load %arg7[%c0_23, %c0_24] : memref<8x1xf32, #tpu.memory_space<vmem>>, vector<8x1xf32>
      tpu.vector_store %arg7[%c0_23, %c0_24], %24 {strides = array<i32>} : memref<8x1xf32, #tpu.memory_space<vmem>>, vector<8x1xf32>,
    } else {
    }
    %c0 = arith.constant 0 : index
    %c0_1 = arith.constant 0 : index
    %3 = vector.load %arg3[%c0, %c0_1] : memref<8x4xf32, #tpu.memory_space<vmem>>, vector<8x4xf32>
    %c0_2 = arith.constant 0 : index
    %c0_3 = arith.constant 0 : index
    %c0_4 = arith.constant 0 : index
    %4 = vector.load %arg2[%c0_2, %c0_3, %c0_4] : memref<1x4x256xf32, #tpu.memory_space<vmem>>, vector<1x4x256xf32>
    %5 = vector.shape_cast %4 : vector<1x4x256xf32> to vector<4x256xf32>
    %cst = arith.constant dense<0.000000e+00> : vector<8x256xf32>
    %6 = tpu.matmul %3, %5, %cst {dimension_numbers = #tpu.dot_dimension_numbers<[1], [0], [0], [1], [0, 0, 1, 1], [], []>} : vector<8x4xf32>, vector<4x256xf32>, vector<8x256xf32> -> vector<8x256xf32>
    %c0_5 = arith.constant 0 : index
    %c0_6 = arith.constant 0 : index
    %7 = vector.load %arg5[%c0_5, %c0_6] : memref<8x256xf32, #tpu.memory_space<vmem>>, vector<8x256xf32>
    tpu.vector_store %arg5[%c0_5, %c0_6], %6 {strides = array<i32>} : memref<8x256xf32, #tpu.memory_space<vmem>>, vector<8x256xf32>,
    %c0_7 = arith.constant 0 : index
    %c0_8 = arith.constant 0 : index
    %8 = vector.load %arg6[%c0_7, %c0_8] : memref<8x1xf32, #tpu.memory_space<vmem>>, vector<8x1xf32>
    %cst_9 = arith.constant dense<0.000000e+00> : vector<8xf32>
    %9 = vector.multi_reduction <add>, %6, %cst_9 [1] : vector<8x256xf32> to vector<8xf32>
    %10 = vector.shape_cast %9 : vector<8xf32> to vector<8x1xf32>
    %11 = arith.addf %8, %10 : vector<8x1xf32>
    %c0_10 = arith.constant 0 : index
    %c0_11 = arith.constant 0 : index
    %12 = vector.load %arg6[%c0_10, %c0_11] : memref<8x1xf32, #tpu.memory_space<vmem>>, vector<8x1xf32>
    tpu.vector_store %arg6[%c0_10, %c0_11], %11 {strides = array<i32>} : memref<8x1xf32, #tpu.memory_space<vmem>>, vector<8x1xf32>,
    %c0_12 = arith.constant 0 : index
    %c0_13 = arith.constant 0 : index
    %13 = vector.load %arg7[%c0_12, %c0_13] : memref<8x1xf32, #tpu.memory_space<vmem>>, vector<8x1xf32>
    %14 = arith.mulf %6, %6 : vector<8x256xf32>
    %cst_14 = arith.constant dense<0.000000e+00> : vector<8xf32>
    %15 = vector.multi_reduction <add>, %14, %cst_14 [1] : vector<8x256xf32> to vector<8xf32>
    %16 = vector.shape_cast %15 : vector<8xf32> to vector<8x1xf32>
    %17 = arith.addf %13, %16 : vector<8x1xf32>
    %c0_15 = arith.constant 0 : index
    %c0_16 = arith.constant 0 : index
    %18 = vector.load %arg7[%c0_15, %c0_16] : memref<8x1xf32, #tpu.memory_space<vmem>>, vector<8x1xf32>
    tpu.vector_store %arg7[%c0_15, %c0_16], %17 {strides = array<i32>} : memref<8x1xf32, #tpu.memory_space<vmem>>, vector<8x1xf32>,
    %c0_i32_17 = arith.constant 0 : i32
    %19 = arith.cmpi eq, %arg1, %c0_i32_17 : i32
    %20 = arith.extui %19 : i1 to i32
    %c0_i32_18 = arith.constant 0 : i32
    %21 = arith.cmpi ne, %20, %c0_i32_18 : i32
    scf.if %21 {
      %c0_19 = arith.constant 0 : index
      %c0_20 = arith.constant 0 : index
      %22 = vector.load %arg6[%c0_19, %c0_20] : memref<8x1xf32, #tpu.memory_space<vmem>>, vector<8x1xf32>
      %cst_21 = arith.constant 3.906250e-03 : f32
      %23 = vector.broadcast %cst_21 : f32 to vector<8x1xf32>
      %24 = arith.mulf %22, %23 : vector<8x1xf32>
      %c0_22 = arith.constant 0 : index
      %c0_23 = arith.constant 0 : index
      %25 = vector.load %arg7[%c0_22, %c0_23] : memref<8x1xf32, #tpu.memory_space<vmem>>, vector<8x1xf32>
      %cst_24 = arith.constant 3.906250e-03 : f32
      %26 = vector.broadcast %cst_24 : f32 to vector<8x1xf32>
      %27 = arith.mulf %25, %26 : vector<8x1xf32>
      %28 = arith.mulf %24, %24 : vector<8x1xf32>
      %29 = arith.subf %27, %28 : vector<8x1xf32>
      %cst_25 = arith.constant 0.000000e+00 : f32
      %30 = vector.broadcast %cst_25 : f32 to vector<8x1xf32>
      %31 = arith.maximumf %29, %30 : vector<8x1xf32>
      %cst_26 = arith.constant 9.99999974E-6 : f32
      %32 = vector.broadcast %cst_26 : f32 to vector<8x1xf32>
      %33 = arith.addf %31, %32 : vector<8x1xf32>
      %34 = math.rsqrt %33 : vector<8x1xf32>
      %c0_27 = arith.constant 0 : index
      %c0_28 = arith.constant 0 : index
      %35 = vector.load %arg5[%c0_27, %c0_28] : memref<8x256xf32, #tpu.memory_space<vmem>>, vector<8x256xf32>
      %36 = vector.broadcast %24 : vector<8x1xf32> to vector<8x256xf32>
      %37 = arith.subf %35, %36 : vector<8x256xf32>
      %38 = vector.broadcast %34 : vector<8x1xf32> to vector<8x256xf32>
      %39 = arith.mulf %37, %38 : vector<8x256xf32>
      %cst_29 = arith.constant 0.000000e+00 : f32
      %40 = vector.broadcast %cst_29 : f32 to vector<8x256xf32>
      %41 = arith.maximumf %39, %40 : vector<8x256xf32>
      %c0_30 = arith.constant 0 : index
      %c0_31 = arith.constant 0 : index
      %c0_32 = arith.constant 0 : index
      %42 = vector.load %arg4[%c0_30, %c0_31, %c0_32] : memref<1x8x256xf32, #tpu.memory_space<vmem>>, vector<1x8x256xf32>
      %43 = vector.shape_cast %42 : vector<1x8x256xf32> to vector<8x256xf32>
      %44 = vector.shape_cast %41 : vector<8x256xf32> to vector<1x8x256xf32>
      tpu.vector_store %arg4[%c0_30, %c0_31, %c0_32], %44 {strides = array<i32>} : memref<1x8x256xf32, #tpu.memory_space<vmem>>, vector<1x8x256xf32>,
    } else {
    }
    return
  }
  func.func @transform_0(%arg0: i32, %arg1: i32) -> (i32, i32, i32) {
    %c0_i32 = arith.constant 0 : i32
    %c0_i32_0 = arith.constant 0 : i32
    return %arg0, %c0_i32, %arg1 : i32, i32, i32
  }
  func.func @transform_1(%arg0: i32, %arg1: i32) -> (i32, i32) {
    %c0_i32 = arith.constant 0 : i32
    %c0_i32_0 = arith.constant 0 : i32
    %c0_i32_1 = arith.constant 0 : i32
    return %c0_i32, %c0_i32_0 : i32, i32
  }
  func.func @transform_2(%arg0: i32, %arg1: i32) -> (i32, i32, i32) {
    %c0_i32 = arith.constant 0 : i32
    %c0_i32_0 = arith.constant 0 : i32
    %c0_i32_1 = arith.constant 0 : i32
    return %arg0, %c0_i32, %c0_i32_0 : i32, i32, i32
  }
}

</mosaic_0001>

<bundles_post_ra>
// kernel: tpu_custom_call.1
= control target key start
LH: loop header
LB: loop body
LE: loop exit
PB: predicated region body
PF: predicated region fallthrough
CT: control target
= control target key end

     0   :  { %7 = vsyncpa [#allocation6], 0  ;;  %s779_s0 = inlined_call_operand.hbm [shape: f32[2,4,256], index: 0, kind: input, shape index: {}]   ;;  %s780_s1 = inlined_call_operand.vmem [shape: f32[8,4], index: 1, kind: input, shape index: {}]   ;;  %s781_s2 = inlined_call_operand.hbm [shape: f32[2,8,256], index: 2, kind: output, shape index: {}]  }
   0x1   :  { %9 = vsyncpa [#allocation6 + $0x1], 0 }
   0x2   :  { %10 = vsyncpa [#allocation7], 0 }
   0x3   :  { %12 = vsyncpa [#allocation7 + $0x1], 0  ;;  %s631_s9 = smov 0   ;;  %s633_s10 = smov 0  }
   0x4   :  { %s635_s11 = smov 0   ;;  %s637_s12 = smov 0  }
   0x5   :  { %s639_s13 = smov 0   ;;  %s641_s14 = smov 0  }
   0x6 LB: > { %s413_s15 = sadd.s32 4294967295, %s610_s14   ;;  %s414_s16 = sadd.s32 4294967294, %s610_s14   ;;  %s610_s14 = sphi %s641_s14, %s18_s14   ;;  %s606_s13 = sphi %s639_s13, %s793_s13   ;;  %s602_s12 = sphi %s637_s12, %s792_s12   ;;  %s598_s11 = sphi %s635_s11, %s791_s11   ;;  %s594_s10 = sphi %s633_s10, %s790_s10   ;;  %s590_s9 = sphi %s631_s9, %s789_s9  }
   0x7   : > { %s30_s17 = sadd.s32 1, %s606_s13  ;;  %s39_s18 = sadd.s32 1, %s598_s11 }
   0x8   : > { %p32_p0 = scmp.ge.s32.totalorder %s30_s17, 2  ;;  %p46_p1 = scmp.ne.s32.totalorder %s598_s11, %s594_s10 }
   0x9   : > { %p47_p2 = scmp.eq.s32.totalorder %s610_s14, 0  ;;  %p52_p3 = scmp.ne.s32.totalorder %s594_s10, %s590_s9 }
   0xa   : > { %s795_s17 = smov (%p32_p0, %s30_s17), 0  ;;  %p53_p5 = scmp.eq.s32.totalorder %s413_s15, 0 }
   0xb   : > { %p672_p4 = por %p47_p2, %p46_p1  ;;  %s34_s20 = ssub.s32 %s606_s13, %s795_s17 }
   0xc   : > { %p97_p6 = scmp.eq.s32.totalorder %s413_s15, 1  ;;  %p37_p7 = scmp.eq.s32.totalorder %s34_s20, 0 }
   0xd   : > { %p678_p8 = por %p53_p5, %p52_p3  ;;  %p103_p10 = scmp.eq.s32.totalorder %s414_s16, 1 }
   0xe   : > { %p682_p9 = por %p97_p6, %p46_p1  ;;  %p445_p13 = scmp.lt.s32.totalorder %s610_s14, 2 }
   0xf   : > { %s687_s23 = scalar_select %p37_p7, %s598_s11, %s39_s18  }
  0x10   : > { %p689_p11 = por %p103_p10, %p52_p3  ;;  %s126_s25 = sand.u32 1, %s598_s11  }
  0x11   : > { %s417_s26 = sshll.u32 %s126_s25, 3  ;;  %s431_s27 = sshll.u32 %s606_s13, 7 }
  0x12   : > { %s785_s24 = scalar_select %p689_p11, 1, 0 }
  0x13   : > { %s138_s30 = scalar_lea.hbm %s779_s0, %s431_s27  ;;  %s130_s3 = scalar_lea.vmem [#allocation5], %s417_s26 }
  0x14   : > { %s140_s4 = sshll.u32 %s130_s3, 4  ;;  %p702_p0 = pnand %p445_p13, %p672_p4  ;;  %s141_s4 = int_to_ptr.vmem [resolvable:$true] %s140_s4 }
  0x15   : > { %p420_p1 = scmp.ge.s32.totalorder %s610_s14, 1  ;;  %p145_p2 = scmp.lt.s32.totalorder %s610_s14, 3 }
  0x16   : > { %s127_s6 = scalar_lea.sflag [#allocation6], %s126_s25  ;;  %p504_p3 = pneg %p702_p0 }
  0x17   : > { %s515_s7 = scalar_lea.vmem %s141_s4, 128  ;;  %s612_s8 = smov [#allocation5]  }
  0x18   : > { %p516_p5 = scmp.ne.s32.totalorder %s141_s4, %s515_s7  ;;  %s520_s15 = sshll.u32 %s612_s8, 4  ;;  %s521_s15 = int_to_ptr.vmem [resolvable:$false] %s520_s15 }
  0x19   : > { %s522_s16 = scalar_lea.vmem %s521_s15, 256  ;;  %p523_p10 = scmp.lt.s32.totalorder %s141_s4, %s521_s15 }
  0x1a   : > { %p518_p6 = pnand %p516_p5, %p504_p3  ;;  %p524_p12 = scmp.lt.s32.totalorder %s522_s16, %s515_s7 }
  0x1c   : > { %p519_p7 = pneg %p518_p6  ;;  %p525_p4 = por %p524_p12, %p523_p10 }
  0x1e   : > { %p526_p13 = pnand %p525_p4, %p519_p7 }
  0x20   : > { %529 = shalt.err (!%p526_p13)
}
  0x21   : > { %440 = dma.hbm_to_vmem [thread:$0]  (!%p702_p0), %s138_s30, 128, %s141_s4, %s127_s6  }
  0x22   : > { %p146_p11 = pnand %p420_p1, %p145_p2 }
  0x23   : > { %s717_s18 = sand.u32 (!%p146_p11), 1, %s594_s10  }
  0x24   : > { %149 = sbr.rel (%p146_p11) target bundleno = 559 (0x22f), region = 28  ;;  %s421_s19 = sshll.u32 (!%p146_p11), %s717_s18, 3 }
  0x25   : > { %s152_s20 = scalar_lea.sflag (!%p146_p11), [#allocation6], %s717_s18  ;;  %s155_s25 = scalar_lea.vmem (!%p146_p11), [#allocation5], %s421_s19 }
  0x29   : > { %581 = dma.done.wait (%p678_p8), %s152_s20, 128  }
  0x2a   : > { %583 = vsyncadd (%p678_p8), %s152_s20, 4294967168  ;;  %vm181_vm0 = vcmask 7168   ;;  %v613_v0 = vmov 0.0   ;;  %v185_v1 = vld [vmem:[%s155_s25] sm:$0xff]  ;;  %vm192_vm1 = vcmask 1043456   ;;  %v184_v3 = vld [vmem:[%s780_s1] sm:$0xff] }
  0x2b   : > { %182 = vst.msk [vmem:[#allocation3] sm:$0xff] %vm181_vm0, %v613_v0  ;;  %183 = vst.msk [vmem:[#allocation4] sm:$0xff] %vm181_vm0, %v613_v0  ;;  %261 = vmatprep.mubr.f32.mxu0 %v613_v0  ;;  %v187_v2 = vcombine.high %v185_v1, %v185_v1  ;;  %vm188_vm2 = vcmask 31744   ;;  %v614_v10 = vmov 0   ;;  %s422_s21 = sshll.u32 %s717_s18, 4  ;;  %s432_s28 = sshll.u32 %s602_s12, 8 }
  0x2c   : > { %497 = vset.pattern.permute.xlu1 %v614_v10  ;;  %498 = vset.pattern.permute.xlu0 %v614_v10  ;;  %s175_s29 = scalar_lea.vmem [#allocation8], %s422_s21  ;;  %s737_s5 = scalar_lea.hbm %s781_s2, %s432_s28 }
  0x2d   : > { %423 = vmatprep.subr.msk.mxu0 %vm192_vm1, %v187_v2  ;;  %s332_s30 = sshll.u32 %s175_s29, 4  ;;  %s318_s6 = scalar_lea.sflag [#allocation7], %s717_s18  ;;  %s333_s30 = int_to_ptr.vmem [resolvable:$true] %s332_s30 }
  0x2e   : > { %424 = vmatpush1.msk.msra.mxu0 %vm192_vm1, %v185_v1  ;;  %s530_s7 = scalar_lea.vmem %s333_s30, 256  ;;  %s615_s12 = smov [#allocation8]  }
  0x2f   : > { %425 = vmatmul.mubr.msk.f32.vlgmr.msra.gmra.mxu0 %vm188_vm2, %v184_v3  ;;  %p531_p8 = scmp.ne.s32.totalorder %s333_s30, %s530_s7  ;;  %s534_s8 = sshll.u32 %s615_s12, 4  ;;  %s535_s8 = int_to_ptr.vmem [resolvable:$false] %s534_s8 }
  0x30   : > { %s536_s15 = scalar_lea.vmem %s535_s8, 512  ;;  %p537_p0 = scmp.lt.s32.totalorder %s333_s30, %s535_s8 }
  0x31   : > { %p532_p11 = pnand %p531_p8, %p682_p9  ;;  %p538_p1 = scmp.lt.s32.totalorder %s536_s15, %s530_s7 }
  0x32   : > { %v270_v11 = vld [vmem:[#allocation3] sm:$0xff]  ;;  %v277_v14 = vld [vmem:[#allocation4] sm:$0xff] }
  0x33   : > { %p533_p12 = pneg %p532_p11  ;;  %p539_p2 = por %p538_p1, %p537_p0 }
  0x35   : > { %p540_p3 = pnand %p539_p2, %p533_p12 }
  0xef   : > { %v263_v4 = vpop.f32.mrf.mxu0 }
  0xf0   : > { %v278_v8 = vmul.f32 %v263_v4, %v263_v4 }
  0xf1   : > { %v265_v5 = vpop.f32.mrf.mxu0 }
  0xf2   : > { %v279_v6 = vmul.f32 %v265_v5, %v265_v5  ;;  %v271_v7 = vadd.f32 %v265_v5, %v263_v4 }
  0xf4   : > { %272 = vadd.xlane.f32.xlu0 %v271_v7  ;;  %v280_v9 = vadd.f32 %v279_v6, %v278_v8 }
  0xf8   : > { %281 = vadd.xlane.f32.xlu0 %v280_v9 }
 0x17d   : > { %v273_v12 = vpop.xlane.xlu0 %272 }
 0x17e   : > { %v274_v13 = vadd.f32 %v273_v12, %v270_v11 }
 0x180   : > { %276 = vst.msk [vmem:[#allocation3] sm:$0xff] %vm181_vm0, %v274_v13 }
 0x181   : > { %v282_v15 = vpop.xlane.xlu0 %281 }
 0x182   : > { %v283_v16 = vadd.f32 %v282_v15, %v277_v14 }
 0x184   : > { %284 = vst.msk [vmem:[#allocation4] sm:$0xff] %vm181_vm0, %v283_v16 }
 0x187   : > { %v288_v17 = vld [vmem:[#allocation3] sm:$0xff] }
 0x188   : > { %v289_v18 = vmul.f32 0.00390625, %v288_v17 }
 0x18a   : > { %301 = vperm.xlu1 %497, %v289_v18   ;;  %v292_v21 = vmul.f32 %v289_v18, %v289_v18 }
 0x18b   : > { %v290_v19 = vld [vmem:[#allocation4] sm:$0xff] }
 0x18c   : > { %v291_v20 = vmul.f32 0.00390625, %v290_v19 }
 0x18e   : > { %v293_v22 = vsub.f32 %v291_v20, %v292_v21 }
 0x190   : > { %v294_v23 = vmax.f32 %v293_v22, 0.0 }
 0x192   : > { %v295_v24 = vadd.f32 1e-05, %v294_v23 }
 0x194   : > { %500 = vrsqrt.f32 %v295_v24 }
 0x1a1   : > { %v501_v25 = vpop.eup %500 }
 0x1a2   : > { %308 = vperm.xlu1 %497, %v501_v25  }
 0x205   : > { %v302_v26 = vpop.permute.xlu1 %301 }
 0x206   : > { %v304_v27 = vsub.f32 %v263_v4, %v302_v26  ;;  %v305_v28 = vsub.f32 %v265_v5, %v302_v26 }
 0x21d   : > { %v309_v29 = vpop.permute.xlu1 %308 }
 0x21e   : > { %v311_v30 = vmul.f32 %v309_v29, %v304_v27  ;;  %v312_v31 = vmul.f32 %v309_v29, %v305_v28 }
 0x220   : > { %v313_v32 = vmax.f32 %v311_v30, 0.0  ;;  %v314_v33 = vmax.f32 %v312_v31, 0.0 }
 0x222   : > { %315 = vst [vmem:[%s175_s29] sm:$0xff] %v313_v32  ;;  %316 = vst [vmem:[%s175_s29 + $0x8] sm:$0xff] %v314_v33 }
 0x223   : > { %543 = shalt.err (!%p540_p3)
}
 0x224   : > { %s544_s16 = scalar_lea.hbm %s737_s5, 256  ;;  %s548_s20 = scalar_lea.hbm %s781_s2, 512 }
 0x225   : > { %p545_p5 = scmp.ne.s32.totalorder %s737_s5, %s544_s16  ;;  %p549_p10 = scmp.lt.s32.totalorder %s737_s5, %s781_s2 }
 0x226   : > { %p550_p4 = scmp.lt.s32.totalorder %s548_s20, %s544_s16 }
 0x227   : > { %p546_p6 = pnand %p545_p5, %p682_p9 }
 0x228   : > { %p551_p13 = por %p550_p4, %p549_p10 }
 0x229   : > { %p547_p7 = pneg %p546_p6 }
 0x22b   : > { %p552_p8 = pnand %p551_p13, %p547_p7 }
 0x22d   : > { %555 = shalt.err (!%p552_p8)
}
 0x22e   : > { %435 = dma.vmem_to_hbm [thread:$0]  (%p682_p9), %s333_s30, 256, %s737_s5, %s318_s6  }
 0x22f PF: > { %s344_s27 = sand.u32 1, %s590_s9   ;;  %p787_p11 = scmp.ne.s32.totalorder %s785_s24, 0 }
 0x230   : > { %p788_p12 = scmp.ge.s32.totalorder %s610_s14, 2  ;;  %s345_s21 = scalar_lea.sflag [#allocation7], %s344_s27 }
 0x232   : > { %p442_p0 = pnand %p788_p12, %p787_p11 }
 0x234   : > { %p443_p1 = pneg %p442_p0 }
 0x236   : > { %585 = dma.done.wait (%p443_p1), %s345_s21, 256  }
 0x237   : > { %587 = vsyncadd (%p443_p1), %s345_s21, 4294967040  ;;  %s18_s14 = sadd.s32 1, %s610_s14   ;;  %s789_s9 = smov %s594_s10 }
 0x238   : > { %p15_p2 = scmp.ge.s32.totalorder %s18_s14, 4   ;;  %s790_s10 = smov %s598_s11 }
 0x239   : > { %s791_s11 = smov %s687_s23  ;;  %s792_s12 = smov %s606_s13 }
 0x23a   : > { %s793_s13 = smov %s795_s17  ;;  %17 = sbr.rel (!%p15_p2) target bundleno = 6 (0x6), region = 81 }
 0x23f   :  { %350 = vsyncpa [#allocation6], 1 }
 0x240   :  { %352 = vsyncpa [#allocation6 + $0x1], 1 }
 0x241   :  { %353 = vsyncpa [#allocation7], 1 }
 0x242   :  { %355 = vsyncpa [#allocation7 + $0x1], 1 }

</bundles_post_ra>
